<compile_context>
chip_gen: v7x
topology: tpu7x:2x2x1
jax: 0.10.0
libtpu: 0.0.40
codegen_flags: <defaults>
</compile_context>

<pallas_src>
import jax
import jax.numpy as jnp
import numpy as np
from jax.experimental import pallas as pl
from jax.experimental.pallas import tpu as pltpu

# ---------------- configuration (KroneckerAdaption defaults) ----------------
IN_DIM = 32          # original_module.in_features
OUT_DIM = 32         # original_module.out_features
LORA_DIM = 4
ALPHA = 1
MULTIPLIER = 1.0
SCALAR = 1.0         # use_scalar=False -> scalar buffer == 1.0
GROUP_NUM = 2
FACTOR = -1
SCALE = ALPHA / LORA_DIM
# per-group (multiplier*scale) is identical for all groups -> fold with scalar*multiplier
DELTA_SCALE = MULTIPLIER * SCALE * SCALAR * MULTIPLIER

PACK = 128 // OUT_DIM          # tokens packed per 128-lane row (= 4)
TILE_ROWS_MAX = 4096           # packed rows per grid step (== 16384 tokens, ~4 MiB/step f32)


def factorization(dimension: int, factor: int = -1):
    """LyCORIS-style factorization: most 'square' m*n == dimension, m <= n."""
    if factor > 0 and (dimension % factor) == 0:
        m, n = factor, dimension // factor
        return (m, n) if m <= n else (n, m)
    if factor < 0:
        factor = dimension
    m, n = 1, dimension
    length = m + n
    while m < n:
        new_m = m + 1
        while dimension % new_m != 0:
            new_m += 1
        new_n = dimension // new_m
        if new_m + new_n > length or new_m > factor:
            break
        m, n = new_m, new_n
    return (m, n) if m <= n else (n, m)


IN_M, IN_N = factorization(IN_DIM, FACTOR)      # (4, 8)
OUT_L, OUT_K = factorization(OUT_DIM, FACTOR)   # (4, 8)
assert OUT_L * OUT_K == OUT_DIM and IN_M * IN_N == IN_DIM
assert LORA_DIM < max(OUT_K, IN_N)
assert PACK * OUT_DIM == 128 and PACK * IN_DIM == 128


def _round_up(v: int, m: int) -> int:
    return (v + m - 1) // m * m


# ------------------------------- Pallas kernel -------------------------------
def kron_linear_kernel(x_ref, w_ref, b_ref, o_ref):
    # x_ref : VMEM (TILE_ROWS, 128)  activation tile, 4 tokens per row (orig dtype)
    # w_ref : VMEM (128, 128)        bf16 block-diagonal fused weight^T = kron(I4, W^T)
    # b_ref : VMEM (1, 128)          f32 bias, tiled 4x
    # o_ref : VMEM (TILE_ROWS, 128)  output tile (4 tokens per row)
    x = x_ref[...].astype(jnp.bfloat16)          # cast on the fly; free under mem roofline
    acc = jnp.dot(x, w_ref[...], preferred_element_type=jnp.float32)
    o_ref[...] = (acc + b_ref[...]).astype(o_ref.dtype)


# --------------------------------- wrapper -----------------------------------
def _fused_weight_transposed(org_w, w1, w2_a, w2_b):
    """weight^T = (org_weight + sum_g kron(w1[g], w2_a[g].T @ w2_b[g].T) * scale).T
    Parameter-only, 32x32 -> computed once per call with plain XLA ops."""
    w2 = jnp.einsum('grk,gnr->gkn', w2_a.astype(jnp.float32),
                    w2_b.astype(jnp.float32))                         # (G, OUT_K, IN_N)
    kron = jnp.einsum('glm,gkn->glkmn', w1.astype(jnp.float32), w2)   # (G,L,K,M,N)
    delta = kron.reshape(GROUP_NUM, OUT_DIM, IN_DIM).sum(axis=0) * DELTA_SCALE
    weight = org_w.astype(jnp.float32) + delta                        # (OUT, IN)
    return weight.T                                                   # (IN, OUT)


def _choose_tile_rows(rows: int, sublane: int) -> int:
    if rows <= sublane:
        return rows                       # single full-extent block (exempt from 8-row rule)
    # Largest aligned tile <= TILE_ROWS_MAX that still gives >= 2 grid steps when there
    # is enough work to split ("parallel" axis -> both v7x TensorCores).
    half = _round_up(pl.cdiv(rows, 2), sublane)
    return min(TILE_ROWS_MAX, half)


@jax.jit
def kronecker_adaption_forward(x, org_w, org_b, w1, w2_a, w2_b):
    lead = x.shape[:-1]
    x2 = x.reshape(-1, IN_DIM)
    t = x2.shape[0]

    # --- parameter-only prep (tiny, once per call) ---------------------------
    wt = _fused_weight_transposed(org_w, w1, w2_a, w2_b)                   # (32, 32) f32
    w_bd = jnp.kron(jnp.eye(PACK, dtype=jnp.float32), wt).astype(jnp.bfloat16)  # (128,128)
    b_tiled = jnp.tile(org_b.astype(jnp.float32), PACK).reshape(1, PACK * OUT_DIM)

    # --- lane-dense packing: 4 tokens per 128-lane row (free reshape) --------
    rem = t % PACK
    if rem:
        # Only pads up to 3 token rows; never triggers for PACK-aligned token counts.
        x2 = jnp.pad(x2, ((0, PACK - rem), (0, 0)))
    rows = x2.shape[0] // PACK
    xp = x2.reshape(rows, PACK * IN_DIM)

    sublane = 16 if x.dtype == jnp.bfloat16 else 8
    tile_rows = _choose_tile_rows(rows, sublane)
    grid = (pl.cdiv(rows, tile_rows),)

    itemsize = np.dtype(x.dtype).itemsize
    cost = pl.CostEstimate(
        flops=2 * rows * (PACK * IN_DIM) * (PACK * OUT_DIM),
        transcendentals=0,
        bytes_accessed=(rows * PACK * IN_DIM * itemsize                 # x
                        + rows * PACK * OUT_DIM * itemsize              # out
                        + (PACK * IN_DIM) * (PACK * OUT_DIM) * 2        # bf16 weight
                        + PACK * OUT_DIM * 4),                          # bias
    )

    out = pl.pallas_call(
        kron_linear_kernel,
        out_shape=jax.ShapeDtypeStruct((rows, PACK * OUT_DIM), x.dtype),
        grid=grid,
        in_specs=[
            pl.BlockSpec((tile_rows, PACK * IN_DIM), lambda i: (i, 0)),      # packed x
            pl.BlockSpec((PACK * IN_DIM, PACK * OUT_DIM), lambda i: (0, 0)), # block-diag W^T
            pl.BlockSpec((1, PACK * OUT_DIM), lambda i: (0, 0)),             # tiled bias
        ],
        out_specs=pl.BlockSpec((tile_rows, PACK * OUT_DIM), lambda i: (i, 0)),
        compiler_params=pltpu.CompilerParams(
            dimension_semantics=("parallel",)),   # shard packed-token tiles across TCs on v7x
        cost_estimate=cost,
    )(xp, w_bd, b_tiled)

    return out.reshape(-1, OUT_DIM)[:t].reshape(*lead, OUT_DIM)


# ----------------------------- pure-JAX reference ----------------------------
def reference_forward(x, org_w, org_b, w1, w2_a, w2_b):
    delta = jnp.zeros((OUT_DIM, IN_DIM), jnp.float32)
    for g in range(GROUP_NUM):
        w2 = w2_a[g].T @ w2_b[g].T                       # (OUT_K, IN_N)
        delta = delta + jnp.kron(w1[g], w2) * (MULTIPLIER * SCALE)
    delta = delta.reshape(OUT_DIM, IN_DIM) * SCALAR * MULTIPLIER
    weight = org_w + delta
    return x @ weight.T + org_b


# ------------------------------------ main ------------------------------------
if __name__ == "__main__":
    key = jax.random.PRNGKey(0)
    k_x, k_w, k_b, k_w1, k_a, k_bb = jax.random.split(key, 6)

    batch, seq = 2, 8
    x = jax.random.normal(k_x, (batch, seq, IN_DIM), dtype=jnp.float32)

    # original Linear(in=32, out=32) weight/bias
    org_w = jax.random.normal(k_w, (OUT_DIM, IN_DIM), dtype=jnp.float32) * 0.05
    org_b = jax.random.normal(k_b, (OUT_DIM,), dtype=jnp.float32) * 0.05

    # adapter params (deterministic synthetic init; torch would kaiming-init these)
    bound = 1.0 / np.sqrt(IN_M)
    w1 = jax.random.uniform(k_w1, (GROUP_NUM, OUT_L, IN_M),
                            minval=-bound, maxval=bound, dtype=jnp.float32)
    w2_a = jax.random.uniform(k_a, (GROUP_NUM, LORA_DIM, OUT_K),
                              minval=-bound, maxval=bound, dtype=jnp.float32)
    w2_b = jax.random.uniform(k_bb, (GROUP_NUM, IN_N, LORA_DIM),
                              minval=-bound, maxval=bound, dtype=jnp.float32)

    out = kronecker_adaption_forward(x, org_w, org_b, w1, w2_a, w2_b)
    out = jax.block_until_ready(out)

    ref = reference_forward(x, org_w, org_b, w1, w2_a, w2_b)
    # bf16 MXU operands (activations + fused weight) -> bf16-level tolerance vs f32 ref
    np.testing.assert_allclose(np.asarray(out), np.asarray(ref), rtol=2e-2, atol=2e-2)

    print("KERNEL_OK")
</pallas_src>

<mosaic_0001>
module attributes {stable_mosaic.version = 11 : i64} {
  func.func @kron_linear_kernel(%arg0: i32, %arg1: memref<4x128xf32, #tpu.memory_space<vmem>>, %arg2: memref<128x128xbf16, #tpu.memory_space<vmem>>, %arg3: memref<1x128xf32, #tpu.memory_space<vmem>>, %arg4: memref<4x128xf32, #tpu.memory_space<vmem>>) attributes {dimension_semantics = [#tpu.dimension_semantics<parallel>], iteration_bounds = array<i64: 1>, scalar_prefetch = 0 : i64, scratch_operands = 0 : i64, tpu.core_type = #tpu.core_type<tc>, window_params = [{transform_indices = @transform_0, window_bounds = array<i64: 4, 128>}, {pipeline_mode = #tpu.pipeline_mode<synchronous>, transform_indices = @transform_1, window_bounds = array<i64: 128, 128>}, {pipeline_mode = #tpu.pipeline_mode<synchronous>, transform_indices = @transform_2, window_bounds = array<i64: 1, 128>}, {transform_indices = @transform_3, window_bounds = array<i64: 4, 128>}]} {
    %c0 = arith.constant 0 : index
    %c0_0 = arith.constant 0 : index
    %0 = vector.load %arg1[%c0, %c0_0] : memref<4x128xf32, #tpu.memory_space<vmem>>, vector<4x128xf32>
    %1 = arith.truncf %0 : vector<4x128xf32> to vector<4x128xbf16>
    %c0_1 = arith.constant 0 : index
    %c0_2 = arith.constant 0 : index
    %2 = vector.load %arg2[%c0_1, %c0_2] : memref<128x128xbf16, #tpu.memory_space<vmem>>, vector<128x128xbf16>
    %cst = arith.constant dense<0.000000e+00> : vector<4x128xf32>
    %3 = tpu.matmul %1, %2, %cst {dimension_numbers = #tpu.dot_dimension_numbers<[1], [0], [0], [1], [0, 0, 1, 1], [], []>} : vector<4x128xbf16>, vector<128x128xbf16>, vector<4x128xf32> -> vector<4x128xf32>
    %c0_3 = arith.constant 0 : index
    %c0_4 = arith.constant 0 : index
    %4 = vector.load %arg3[%c0_3, %c0_4] : memref<1x128xf32, #tpu.memory_space<vmem>>, vector<1x128xf32>
    %5 = vector.broadcast %4 : vector<1x128xf32> to vector<4x128xf32>
    %6 = arith.addf %3, %5 : vector<4x128xf32>
    %c0_5 = arith.constant 0 : index
    %c0_6 = arith.constant 0 : index
    %7 = vector.load %arg4[%c0_5, %c0_6] : memref<4x128xf32, #tpu.memory_space<vmem>>, vector<4x128xf32>
    tpu.vector_store %arg4[%c0_5, %c0_6], %6 {strides = array<i32>} : memref<4x128xf32, #tpu.memory_space<vmem>>, vector<4x128xf32>,
    return
  }
  func.func @transform_0(%arg0: i32) -> (i32, i32) {
    %c0_i32 = arith.constant 0 : i32
    %c0_i32_0 = arith.constant 0 : i32
    return %arg0, %c0_i32 : i32, i32
  }
  func.func @transform_1(%arg0: i32) -> (i32, i32) {
    %c0_i32 = arith.constant 0 : i32
    %c0_i32_0 = arith.constant 0 : i32
    %c0_i32_1 = arith.constant 0 : i32
    return %c0_i32, %c0_i32_0 : i32, i32
  }
  func.func @transform_2(%arg0: i32) -> (i32, i32) {
    %c0_i32 = arith.constant 0 : i32
    %c0_i32_0 = arith.constant 0 : i32
    %c0_i32_1 = arith.constant 0 : i32
    return %c0_i32, %c0_i32_0 : i32, i32
  }
  func.func @transform_3(%arg0: i32) -> (i32, i32) {
    %c0_i32 = arith.constant 0 : i32
    %c0_i32_0 = arith.constant 0 : i32
    return %arg0, %c0_i32 : i32, i32
  }
}

</mosaic_0001>

<bundles_post_ra>
// kernel: tile.8
= control target key start
LH: loop header
LB: loop body
LE: loop exit
PB: predicated region body
PF: predicated region fallthrough
CT: control target
= control target key end

     0   :  { %s22_s0 = inlined_call_operand.vmem [shape: f32[32], index: 0, kind: input, shape index: {}]   ;;  %s23_s1 = inlined_call_operand.vmem [shape: f32[4,32], index: 1, kind: output, shape index: {}]  }
   0x1   :  { %v4_v0 = vld [vmem:[%s22_s0] ss:$0 sm:$0xff] }
   0x2   :  { %5 = vst [vmem:[%s23_s1] sm:$0xf] %v4_v0 }

// kernel: tile.9
= control target key start
LH: loop header
LB: loop body
LE: loop exit
PB: predicated region body
PF: predicated region fallthrough
CT: control target
= control target key end

     0   :  { %vm7_vm0 = vcmask 261120   ;;  %s37_s8 = smov 32   ;;  %s38_s9 = smov 64   ;;  %vm13_vm1 = vcmask 1048320   ;;  %vm19_vm2 = vcmask 785920   ;;  %vm25_vm3 = vcmask 523520   ;;  %s55_s0 = inlined_call_operand.vmem [shape: f32[4,32], index: 0, kind: input, shape index: {}]   ;;  %s56_s1 = inlined_call_operand.vmem [shape: f32[1,128], index: 1, kind: output, shape index: {}]  }
   0x1   :  { %v4_v0 = vld [vmem:[%s55_s0] sm:$0xf]  ;;  %s36_s0 = smov 96  }
   0x2   :  { %5 = vst [vmem:[#allocation1] sm:$0xf] %v4_v0 }
   0x9   :  { %v10_v1 = vld [vmem:[#allocation1 + $0x3] sm:$0x1]   ;;  %v22_v2 = vld [vmem:[#allocation1 + $0x1] sm:$0x1]   ;;  %v6_v3 = vld [vmem:[#allocation1] sm:$0x1]  }
   0xa   :  { %11 = vrot.lane.b32.xlu0 %v10_v1, %s36_s0  ;;  %23 = vrot.lane.b32.xlu1 %v22_v2, %s37_s8  ;;  %v16_v4 = vld [vmem:[#allocation1 + $0x2] sm:$0x1]   ;;  %8 = vst.msk [vmem:[#allocation0] sm:$0x1] %vm7_vm0, %v6_v3  }
   0xe   :  { %17 = vrot.lane.b32.xlu0 %v16_v4, %s38_s9 }
  0x7c   :  { %v12_v5 = vpop.permute.xlu0 %11   ;;  %v24_v6 = vpop.permute.xlu1 %23  }
  0x7d   :  { %14 = vst.msk [vmem:[#allocation0] sm:$0x1] %vm13_vm1, %v12_v5  }
  0x80   :  { %v18_v7 = vpop.permute.xlu0 %17  }
  0x81   :  { %20 = vst.msk [vmem:[#allocation0] sm:$0x1] %vm19_vm2, %v18_v7  }
  0x82   :  { %26 = vst.msk [vmem:[#allocation0] sm:$0x1] %vm25_vm3, %v24_v6  }
  0x89   :  { %v30_v8 = vld [vmem:[#allocation0] sm:$0x1] }
  0x8a   :  { %32 = vst [vmem:[%s56_s1] sm:$0x1] %v30_v8 }

// kernel: kronecker_adaption_forward.1
= control target key start
LH: loop header
LB: loop body
LE: loop exit
PB: predicated region body
PF: predicated region fallthrough
CT: control target
= control target key end

     0   :  { %v181_v0 = vmov 0.0   ;;  %vm182_vm0 = vmmov 0   ;;  %s236_s1 = inlined_call_operand.vmem [shape: bf16[128,128], index: 1, kind: input, shape index: {}]   ;;  %s237_s0 = inlined_call_operand.vmem [shape: f32[4,128], index: 0, kind: input, shape index: {}]   ;;  %s238_s2 = inlined_call_operand.vmem [shape: f32[1,128], index: 2, kind: input, shape index: {}]   ;;  %s239_s3 = inlined_call_operand.vmem [shape: f32[4,128], index: 3, kind: output, shape index: {}]  }
   0x1   :  { %151 = vmatprep.subr.bf16.mxu0 %v181_v0  ;;  %v173_v1 = vld [vmem:[%s236_s1] sm:$0xff]   ;;  %167 = vmatprep.mubr.msk.bf16.mxu0 %vm182_vm0, %v181_v0  ;;  %v174_v2 = vld [vmem:[%s236_s1 + $0x8] sm:$0xff]   ;;  %v175_v3 = vld [vmem:[%s236_s1 + $0x10] sm:$0xff]  }
   0x2   :  { %152 = vmatpush3.bf16.msra.mxu0 %v173_v1  ;;  %v176_v4 = vld [vmem:[%s236_s1 + $0x18] sm:$0xff]   ;;  %v177_v5 = vld [vmem:[%s236_s1 + $0x20] sm:$0xff]   ;;  %v178_v6 = vld [vmem:[%s236_s1 + $0x28] sm:$0xff]  }
   0x3   :  { %153 = vmatprep.subr.bf16.mxu0 %v181_v0  ;;  %v179_v7 = vld [vmem:[%s236_s1 + $0x30] sm:$0xff]   ;;  %v180_v8 = vld [vmem:[%s236_s1 + $0x38] sm:$0xff]   ;;  %v15_v9 = vld [vmem:[%s237_s0] sm:$0xf] }
   0x4   :  { %v16_v10 = vpack.c.bf16 %v15_v9, %v15_v9  ;;  %v133_v11 = vld [vmem:[%s238_s2] ss:$0 sm:$0xff] }
   0x6   :  { %154 = vmatpush3.bf16.msra.mxu0 %v174_v2 }
   0x7   :  { %155 = vmatprep.subr.bf16.mxu0 %v181_v0 }
   0xa   :  { %156 = vmatpush3.bf16.msra.mxu0 %v175_v3 }
   0xb   :  { %157 = vmatprep.subr.bf16.mxu0 %v181_v0 }
   0xe   :  { %158 = vmatpush3.bf16.msra.mxu0 %v176_v4 }
   0xf   :  { %159 = vmatprep.subr.bf16.mxu0 %v181_v0 }
  0x12   :  { %160 = vmatpush3.bf16.msra.mxu0 %v177_v5 }
  0x13   :  { %161 = vmatprep.subr.bf16.mxu0 %v181_v0 }
  0x16   :  { %162 = vmatpush3.bf16.msra.mxu0 %v178_v6 }
  0x17   :  { %163 = vmatprep.subr.bf16.mxu0 %v181_v0 }
  0x1a   :  { %164 = vmatpush3.bf16.msra.mxu0 %v179_v7 }
  0x1b   :  { %165 = vmatprep.subr.bf16.mxu0 %v181_v0 }
  0x1e   :  { %166 = vmatpush3.bf16.msra.mxu0 %v180_v8 }
  0x21   :  { %168 = vmatmul.mubr.bf16.vlgmr.msra.gmra.mrb[0].mxu0 %v16_v10 }
  0xf4   :  { %v122_v12 = vpop.f32.mrb[0].mxu0 }
  0xf5   :  { %v123_v13 = vadd.f32 %v133_v11, %v122_v12  ;;  %v169_v14 = vpop.f32.mrb[1].mxu0 }
  0xf6   :  { %v125_v15 = vpop.f32.mrb[2].mxu0 }
  0xf7   :  { %128 = vst [vmem:[%s239_s3] sm:$0xf] %v123_v13  ;;  %v170_v16 = vpop.f32.mrb[3].mxu0 }

</bundles_post_ra>
